<compile_context>
chip_gen: v5e
topology: v5e:2x2
jax: 0.10.0
libtpu: 0.0.40
codegen_flags: <defaults>
</compile_context>

<pallas_src>
import jax
import jax.numpy as jnp
from jax import lax
from jax.experimental import pallas as pl
from jax.experimental.pallas import tpu as pltpu


def _round_up(x, m):
    return ((x + m - 1) // m) * m


# ----------------------------- Pallas kernels ------------------------------

def _conv_matmul_kernel(w_ref, p_ref, o_ref):
    # w_ref: (Cout_p, Kp)  conv weight with bias folded in (resident across grid)
    # p_ref: (Kp, tm)      im2col patch tile (ones row feeds the bias column)
    # o_ref: (Cout_p, tm)  lane-dense output tile (last dim multiple of 128)
    o_ref[...] = jnp.dot(w_ref[...], p_ref[...],
                         preferred_element_type=jnp.float32).astype(o_ref.dtype)


# ----------------------------- conv wrapper ---------------------------------

def conv2d_pallas(x, weight, bias, tm=256):
    """Conv2d 3x3, stride 1, padding 1; NCHW in / NCHW out.

    Lowered to a (Cout, M)-oriented matmul tiled over M = B*H*W.
    `tm` (multiple of 128) bounds VMEM to ~2*tm*Kp*4 + tm*Cout_p*4 bytes;
    sweep 512-2048 for real scalenet inputs, halve on v7x (64 MiB VMEM / TC).
    """
    B, Cin, H, W = x.shape
    Cout, _, KH, KW = weight.shape
    assert (KH, KW) == (3, 3)

    M = B * H * W
    K = Cin * KH * KW

    # im2col written ONCE, directly in the (K, M) layout the kernel consumes.
    # TODO(synk): building the 9 shifted taps inside the kernel from a padded
    # input slab would cut HBM reads ~9x; kept as XLA glue here for robustness.
    xp = jnp.pad(x, ((0, 0), (0, 0), (1, 1), (1, 1)))
    taps = [xp[:, :, kh:kh + H, kw:kw + W] for kh in range(KH) for kw in range(KW)]
    patches = jnp.stack(taps, axis=2)                           # (B, Cin, 9, H, W)
    patches = patches.transpose(1, 2, 0, 3, 4).reshape(K, M)    # K=(ci,kh,kw), M=(b,h,w)

    # Fold the bias into the matmul: ones row in patches, bias column in W.
    patches = jnp.concatenate([patches, jnp.ones((1, M), patches.dtype)], axis=0)
    w2d = weight.reshape(Cout, K)
    w2d = jnp.concatenate([w2d, bias.reshape(Cout, 1)], axis=1)  # (Cout, K+1)

    # Pad to TPU-friendly sizes.
    Kp = _round_up(K + 1, 8)
    Cout_p = _round_up(Cout, 8)
    tm = max(128, _round_up(min(tm, M), 128))
    Mp = _round_up(M, tm)
    patches = jnp.pad(patches, ((0, Kp - (K + 1)), (0, Mp - M)))
    w2d = jnp.pad(w2d, ((0, Cout_p - Cout), (0, Kp - (K + 1))))

    cost = pl.CostEstimate(
        flops=2 * Mp * Kp * Cout_p,
        transcendentals=0,
        bytes_accessed=4 * (Kp * Mp + Cout_p * Kp + Cout_p * Mp),
    )

    out2d = pl.pallas_call(
        _conv_matmul_kernel,
        out_shape=jax.ShapeDtypeStruct((Cout_p, Mp), jnp.float32),
        grid=(Mp // tm,),
        in_specs=[
            pl.BlockSpec((Cout_p, Kp), lambda i: (0, 0)),   # weight stays resident
            pl.BlockSpec((Kp, tm), lambda i: (0, i)),       # patch tiles pipelined
        ],
        out_specs=pl.BlockSpec((Cout_p, tm), lambda i: (0, i)),
        compiler_params=pltpu.CompilerParams(
            dimension_semantics=("parallel",)),             # v7x: shard M over 2 TCs
        cost_estimate=cost,
    )(w2d, patches)

    # (Cout, M) -> NCHW (already channel-major, so just reshape + batch transpose).
    return out2d[:Cout, :M].reshape(Cout, B, H, W).transpose(1, 0, 2, 3)


# ----------------------------- channel stats --------------------------------

def channel_stats_pallas(x, tn=128):
    """Per-channel mean and unbiased variance of an NCHW tensor (the
    _Initializer.mean/std helpers with per_channel=True).

    Tiled over N = B*H*W (tn a multiple of 128, sweep 512-4096 for real sizes);
    a running (mean, M2) pair is kept in VMEM scratch and merged per tile with
    Chan's parallel-variance formula, finalized on the last grid step.
    """
    B, C, H, W = x.shape
    N = B * H * W
    Cp = _round_up(C, 8)
    tn = max(128, _round_up(min(tn, N), 128))
    Np = _round_up(N, tn)
    num_tiles = Np // tn

    xc = x.transpose(1, 0, 2, 3).reshape(C, N)
    xc = jnp.pad(xc, ((0, Cp - C), (0, Np - N)))

    def kernel(x_ref, mean_ref, var_ref, mean_acc, m2_acc):
        i = pl.program_id(0)

        @pl.when(i == 0)
        def _():
            mean_acc[...] = jnp.zeros_like(mean_acc)
            m2_acc[...] = jnp.zeros_like(m2_acc)

        xt = x_ref[...].astype(jnp.float32)                        # (Cp, tn)
        col = i * tn + lax.broadcasted_iota(jnp.int32, (Cp, tn), 1)
        mask = col < N                                             # drop padded cols
        xm = jnp.where(mask, xt, 0.0)

        n_b = jnp.minimum(tn, N - i * tn).astype(jnp.float32)      # valid cols in tile
        m_b = jnp.sum(xm, axis=1, keepdims=True) / n_b             # (Cp, 1) tile mean
        d = jnp.where(mask, xt - m_b, 0.0)
        m2_b = jnp.sum(d * d, axis=1, keepdims=True)               # (Cp, 1) tile M2

        # Chan parallel-variance merge into the running accumulator.
        n_a = (i * tn).astype(jnp.float32)                         # count already seen
        n_ab = n_a + n_b
        delta = m_b - mean_acc[...]
        mean_acc[...] = mean_acc[...] + delta * (n_b / n_ab)
        m2_acc[...] = m2_acc[...] + m2_b + delta * delta * (n_a * n_b / n_ab)

        @pl.when(i == num_tiles - 1)
        def _():
            mean_ref[...] = mean_acc[...]
            var_ref[...] = m2_acc[...] * (1.0 / max(N - 1, 1))     # unbiased, guarded

    cost = pl.CostEstimate(
        flops=5 * Cp * Np,
        transcendentals=0,
        bytes_accessed=4 * (Cp * Np + 2 * Cp),
    )

    mean_c, var_c = pl.pallas_call(
        kernel,
        out_shape=(jax.ShapeDtypeStruct((Cp, 1), jnp.float32),
                   jax.ShapeDtypeStruct((Cp, 1), jnp.float32)),
        grid=(num_tiles,),
        in_specs=[pl.BlockSpec((Cp, tn), lambda i: (0, i))],
        out_specs=(pl.BlockSpec((Cp, 1), lambda i: (0, 0)),
                   pl.BlockSpec((Cp, 1), lambda i: (0, 0))),
        scratch_shapes=[pltpu.VMEM((Cp, 1), jnp.float32),
                        pltpu.VMEM((Cp, 1), jnp.float32)],
        compiler_params=pltpu.CompilerParams(
            dimension_semantics=("arbitrary",)),                   # grid axis is a reduction
        cost_estimate=cost,
    )(xc)

    return mean_c[:C, 0], var_c[:C, 0]


# ----------------------------- module wrapper --------------------------------

class InitializerPallas:
    """JAX/Pallas equivalent of _Initializer wrapping a Conv2d(4->8, 3x3, pad=1)."""

    def __init__(self, weight, bias, per_channel=True):
        self._weight = weight
        self._bias = bias
        self.per_channel = per_channel
        self.initializing = False

    @property
    def weight(self):
        return self._weight

    @property
    def bias(self):
        return self._bias

    def expand_dims(self, x, ndim):
        return x.reshape(x.shape + (1,) * (ndim - 1))

    # TODO(synk): initialize(x) raises NotImplementedError in the PyTorch base
    # class; subclasses implement it using the mean/std helpers below.
    def initialize(self, x):
        raise NotImplementedError

    def mean(self, x, per_channel=False):
        if per_channel:
            m, _ = channel_stats_pallas(x)
            return m
        return jnp.mean(x)

    def std(self, x, per_channel=False):
        if per_channel:
            _, v = channel_stats_pallas(x)
            return jnp.sqrt(jnp.mean(v))
        n = x.size  # global torch .std() is unbiased
        return jnp.sqrt(jnp.sum((x - jnp.mean(x)) ** 2) / (n - 1))

    def __call__(self, x):
        # forward(): the `initializing` branch is a no-op here (initialize is
        # abstract in the base class), then y = self.module(x).
        return conv2d_pallas(x, self._weight, self._bias)


# ----------------------------- main ------------------------------------------

if __name__ == "__main__":
    key = jax.random.PRNGKey(0)
    kx, kw, kb = jax.random.split(key, 3)

    B, Cin, Cout, H, W = 2, 4, 8, 16, 16
    x = jax.random.normal(kx, (B, Cin, H, W), dtype=jnp.float32)
    weight = 0.1 * jax.random.normal(kw, (Cout, Cin, 3, 3), dtype=jnp.float32)
    bias = 0.05 * jax.random.normal(kb, (Cout,), dtype=jnp.float32)

    mod = InitializerPallas(weight, bias, per_channel=True)

    y = mod(x)
    y = jax.block_until_ready(y)

    # reference check for the conv forward
    y_ref = jax.lax.conv_general_dilated(
        x, weight, window_strides=(1, 1), padding="SAME",
        dimension_numbers=("NCHW", "OIHW", "NCHW"))
    y_ref = y_ref + bias.reshape(1, Cout, 1, 1)
    assert y.shape == (B, Cout, H, W)
    assert jnp.allclose(y, y_ref, atol=1e-4, rtol=1e-4)

    # exercise the per-channel stats helpers (used by subclasses' initialize())
    m_c = mod.mean(x, per_channel=True)
    s = mod.std(x, per_channel=True)
    m_ref = jnp.mean(x.transpose(1, 0, 2, 3).reshape(Cin, -1), axis=1)
    v_ref = jnp.var(x.transpose(1, 0, 2, 3).reshape(Cin, -1), axis=1, ddof=1)
    s_ref = jnp.sqrt(jnp.mean(v_ref))
    assert jnp.allclose(m_c, m_ref, atol=1e-5)
    assert jnp.allclose(s, s_ref, atol=1e-5)
    jax.block_until_ready((m_c, s))

    print("KERNEL_OK")
</pallas_src>

<mosaic_0001>
module attributes {stable_mosaic.version = 11 : i64} {
  func.func @_conv_matmul_kernel(%arg0: i32, %arg1: memref<8x40xf32, #tpu.memory_space<vmem>>, %arg2: memref<40x256xf32, #tpu.memory_space<vmem>>, %arg3: memref<8x256xf32, #tpu.memory_space<vmem>>) attributes {dimension_semantics = [#tpu.dimension_semantics<parallel>], iteration_bounds = array<i64: 2>, scalar_prefetch = 0 : i64, scratch_operands = 0 : i64, tpu.core_type = #tpu.core_type<tc>, window_params = [{pipeline_mode = #tpu.pipeline_mode<synchronous>, transform_indices = @transform_0, window_bounds = array<i64: 8, 40>}, {transform_indices = @transform_1, window_bounds = array<i64: 40, 256>}, {transform_indices = @transform_2, window_bounds = array<i64: 8, 256>}]} {
    %c0 = arith.constant 0 : index
    %c0_0 = arith.constant 0 : index
    %0 = vector.load %arg1[%c0, %c0_0] : memref<8x40xf32, #tpu.memory_space<vmem>>, vector<8x40xf32>
    %c0_1 = arith.constant 0 : index
    %c0_2 = arith.constant 0 : index
    %1 = vector.load %arg2[%c0_1, %c0_2] : memref<40x256xf32, #tpu.memory_space<vmem>>, vector<40x256xf32>
    %cst = arith.constant dense<0.000000e+00> : vector<8x256xf32>
    %2 = tpu.matmul %0, %1, %cst {dimension_numbers = #tpu.dot_dimension_numbers<[1], [0], [0], [1], [0, 0, 1, 1], [], []>} : vector<8x40xf32>, vector<40x256xf32>, vector<8x256xf32> -> vector<8x256xf32>
    %c0_3 = arith.constant 0 : index
    %c0_4 = arith.constant 0 : index
    %3 = vector.load %arg3[%c0_3, %c0_4] : memref<8x256xf32, #tpu.memory_space<vmem>>, vector<8x256xf32>
    tpu.vector_store %arg3[%c0_3, %c0_4], %2 {strides = array<i32>} : memref<8x256xf32, #tpu.memory_space<vmem>>, vector<8x256xf32>,
    return
  }
  func.func @transform_0(%arg0: i32) -> (i32, i32) {
    %c0_i32 = arith.constant 0 : i32
    %c0_i32_0 = arith.constant 0 : i32
    %c0_i32_1 = arith.constant 0 : i32
    return %c0_i32, %c0_i32_0 : i32, i32
  }
  func.func @transform_1(%arg0: i32) -> (i32, i32) {
    %c0_i32 = arith.constant 0 : i32
    %c0_i32_0 = arith.constant 0 : i32
    return %c0_i32, %arg0 : i32, i32
  }
  func.func @transform_2(%arg0: i32) -> (i32, i32) {
    %c0_i32 = arith.constant 0 : i32
    %c0_i32_0 = arith.constant 0 : i32
    return %c0_i32, %arg0 : i32, i32
  }
}

</mosaic_0001>

<bundles_post_ra>
// kernel: tpu_custom_call.1
= control target key start
LH: loop header
LB: loop body
LE: loop exit
PB: predicated region body
PF: predicated region fallthrough
CT: control target
= control target key end

     0   :  { %7 = vsyncpa [#allocation3], 0  ;;  %s711_s0 = inlined_call_operand.hbm [shape: f32[8,40], index: 0, kind: input, shape index: {}]   ;;  %s712_s1 = inlined_call_operand.hbm [shape: f32[40,512], index: 1, kind: input, shape index: {}]   ;;  %s713_s2 = inlined_call_operand.hbm [shape: f32[8,512], index: 2, kind: output, shape index: {}]  }
   0x1   :  { %8 = vsyncpa [#allocation6], 0 }
   0x2   :  { %10 = vsyncpa [#allocation6 + $0x1], 0 }
   0x3   :  { %11 = vsyncpa [#allocation4], 0 }
   0x4   :  { %13 = vsyncpa [#allocation4 + $0x1], 0  ;;  %s568_s9 = smov 0   ;;  %s570_s10 = smov 0  }
   0x5   :  { %s572_s11 = smov 0   ;;  %s574_s12 = smov 0  }
   0x6 LB: > { %s589_s13 = sadd.s32 4294967295, %s547_s12   ;;  %s337_s14 = sadd.s32 4294967294, %s547_s12   ;;  %s547_s12 = sphi %s574_s12, %s724_s12   ;;  %s543_s11 = sphi %s572_s11, %s723_s11   ;;  %s539_s10 = sphi %s570_s10, %s722_s10   ;;  %s535_s9 = sphi %s568_s9, %s721_s9  }
   0x7   : > { %s593_s15 = sadd.s32 1, %s547_s12   ;;  %s47_s16 = sadd.s32 1, %s543_s11 }
   0x8   : > { %s44_s17 = ssub.s32 %s547_s12, %s593_s15  ;;  %p54_p0 = scmp.ne.s32.totalorder %s543_s11, %s539_s10 }
   0x9   : > { %p45_p1 = scmp.eq.s32.totalorder %s44_s17, 0  ;;  %p55_p2 = scmp.eq.s32.totalorder %s547_s12, 0 }
   0xa   : > { %p60_p3 = scmp.ne.s32.totalorder %s539_s10, %s535_s9  ;;  %p61_p4 = scmp.eq.s32.totalorder %s589_s13, 0 }
   0xb   : > { %s605_s18 = scalar_select %p45_p1, %s543_s11, %s47_s16  }
   0xc   : > { %p607_p5 = por %p55_p2, %p54_p0  ;;  %p613_p6 = por %p61_p4, %p60_p3 }
   0xd   : > { %p84_p7 = scmp.eq.s32.totalorder %s589_s13, 1  ;;  %p90_p8 = scmp.eq.s32.totalorder %s337_s14, 1 }
   0xe   : > { %p338_p9 = scmp.ge.s32.totalorder %s547_s12, 1  ;;  %p97_p10 = scmp.lt.s32.totalorder %s547_s12, 3 }
   0xf   : > { %p620_p11 = por %p84_p7, %p54_p0  ;;  %p624_p12 = por %p90_p8, %p60_p3 }
  0x10   : > { %p628_p13 = pnand %p338_p9, %p97_p10  ;;  %s109_s26 = sshll.u32 %s711_s0, 4  ;;  %s110_s26 = int_to_ptr.hbm [resolvable:$true] %s109_s26 }
  0x11   : > { %s549_s27 = smov [#allocation2]   ;;  %p378_p3 = scmp.lt.s32.totalorder %s547_s12, 2 }
  0x12   : > { %p365_p1 = pneg %p628_p13  ;;  %s111_s28 = sshll.u32 %s549_s27, 4  ;;  %s112_s28 = int_to_ptr.vmem [resolvable:$true] %s111_s28 }
  0x13   : > { %s122_s29 = sand.u32 1, %s543_s11   ;;  %p644_p7 = pnand %p378_p3, %p607_p5 }
  0x14   : > { %p366_p2 = pnand %p365_p1, %p61_p4  ;;  %s355_s3 = smul.u32 80, %s122_s29 }
  0x15   : > { %s353_s4 = sshll.u32 %s547_s12, 4  ;;  %s123_s17 = scalar_lea.sflag [#allocation6], %s122_s29 }
  0x16   : > { %368 = dma.hbm_to_vmem [thread:$0]  (!%p366_p2), %s110_s26, 128, %s112_s28, [#allocation3]  }
  0x17   : > { %s131_s7 = scalar_lea.hbm %s712_s1, %s353_s4  ;;  %s126_s8 = scalar_lea.vmem [#allocation5], %s355_s3 }
  0x18   : > { %s134_s14 = sshll.u32 %s126_s8, 4  ;;  %s132_s16 = sshll.u32 %s131_s7, 4  ;;  %s135_s14 = int_to_ptr.vmem [resolvable:$true] %s134_s14  ;;  %s133_s16 = int_to_ptr.hbm [resolvable:$true] %s132_s16 }
  0x19   : > { %s447_s24 = sshra.s32 %s133_s16, 4  ;;  %p451_p8 = pneg %p644_p7  ;;  %s448_s24 = int_to_ptr.hbm [resolvable:$true] %s447_s24 }
  0x1a   : > { %s449_s19 = scalar_lea.hbm %s448_s24, 80  ;;  %s454_s27 = scalar_lea.hbm %s712_s1, 160 }
  0x1b   : > { %p450_p5 = scmp.ne.s32.totalorder %s448_s24, %s449_s19  ;;  %p455_p1 = scmp.lt.s32.totalorder %s448_s24, %s712_s1 }
  0x1c   : > { %p456_p2 = scmp.lt.s32.totalorder %s454_s27, %s449_s19 }
  0x1d   : > { %p452_p9 = pnand %p451_p8, %p450_p5 }
  0x1e   : > { %p457_p3 = por %p456_p2, %p455_p1 }
  0x1f   : > { %p453_p10 = pneg %p452_p9 }
  0x21   : > { %p458_p0 = pnand %p457_p3, %p453_p10 }
  0x23   : > { %461 = shalt.err (!%p458_p0)
}
  0x24   : > { %s550_s29 = smov 512   ;;  %s551_s3 = smov 256  }
  0x25   : > { %s552_s5 = smov 16   ;;  %146 = sbr.rel (%p628_p13) target bundleno = 188 (0xbc), region = 28 }
  0x26   : > { %372 = dma.hbm_to_vmem [thread:$0]  (!%p644_p7), %s133_s16, 1280, %s135_s14, %s123_s17, %s550_s29, %s551_s3, %s552_s5  }
  0x2a   : > { %522 = dma.done.wait (%p61_p4), [#allocation3], 128  }
  0x2b   : > { %524 = vsyncadd (%p61_p4), [#allocation3], 4294967168  ;;  %s669_s6 = sand.u32 1, %s539_s10  }
  0x2c   : > { %s356_s7 = smul.u32 80, %s669_s6  ;;  %s154_s8 = scalar_lea.sflag [#allocation6], %s669_s6 }
  0x2e   : > { %s157_s24 = scalar_lea.vmem [#allocation5], %s356_s7 }
  0x2f   : > { %526 = dma.done.wait (%p613_p6), %s154_s8, 1280  }
  0x30   : > { %528 = vsyncadd (%p613_p6), %s154_s8, 4294966016  ;;  %v190_v0 = vld [vmem:[%s157_s24 + $0x40] sm:$0xff]  ;;  %v191_v1 = vld [vmem:[%s157_s24 + $0x48] sm:$0xff]  ;;  %vm192_vm0 = vcmask 326656   ;;  %s345_s20 = sshll.u32 %s669_s6, 4  ;;  %s354_s23 = sshll.u32 %s589_s13, 4 }
  0x31   : > { %v188_v2 = vld [vmem:[%s157_s24 + $0x30] sm:$0xff]  ;;  %207 = vmatpush.msra.mxu0 %v190_v0  ;;  %227 = vmatpush.msra.mxu1 %v191_v1  ;;  %v189_v3 = vld [vmem:[%s157_s24 + $0x38] sm:$0xff]  ;;  %v186_v4 = vld [vmem:[%s157_s24 + $0x20] sm:$0xff]  ;;  %s250_s16 = scalar_lea.hbm %s713_s2, %s354_s23  ;;  %s178_s17 = scalar_lea.vmem [#allocation7], %s345_s20 }
  0x32   : > { %v187_v5 = vld [vmem:[%s157_s24 + $0x28] sm:$0xff]  ;;  %v184_v6 = vld [vmem:[%s157_s24 + $0x10] sm:$0xff]  ;;  %v185_v7 = vld [vmem:[%s157_s24 + $0x18] sm:$0xff]  ;;  %s252_s19 = sshll.u32 %s178_s17, 4  ;;  %s254_s25 = sshll.u32 %s250_s16, 4  ;;  %s253_s19 = int_to_ptr.vmem [resolvable:$true] %s252_s19  ;;  %s255_s25 = int_to_ptr.hbm [resolvable:$true] %s254_s25 }
  0x33   : > { %208 = vmatpush.msra.mxu0 %v188_v2  ;;  %228 = vmatpush.msra.mxu1 %v189_v3  ;;  %v182_v8 = vld [vmem:[%s157_s24] sm:$0xff]  ;;  %v183_v9 = vld [vmem:[%s157_s24 + $0x8] sm:$0xff]  ;;  %s239_s26 = scalar_lea.sflag [#allocation4], %s669_s6  ;;  %s491_s27 = sshra.s32 %s255_s25, 4  ;;  %s492_s27 = int_to_ptr.hbm [resolvable:$true] %s491_s27 }
  0x34   : > { %v181_v10 = vld [vmem:[#allocation2] sm:$0xff]  ;;  %s493_s28 = scalar_lea.hbm %s492_s27, 16  ;;  %s497_s29 = scalar_lea.hbm %s713_s2, 32 }
  0x35   : > { %209 = vmatpush.msra.mxu0 %v186_v4  ;;  %229 = vmatpush.msra.mxu1 %v187_v5  ;;  %p494_p4 = scmp.ne.s32.totalorder %s492_s27, %s493_s28  ;;  %p498_p0 = scmp.lt.s32.totalorder %s492_s27, %s713_s2 }
  0x36   : > { %p499_p7 = scmp.lt.s32.totalorder %s497_s29, %s493_s28 }
  0x37   : > { %210 = vmatpush.msra.mxu0 %v184_v6  ;;  %230 = vmatpush.msra.mxu1 %v185_v7  ;;  %p495_p6 = pnand %p494_p4, %p620_p11 }
  0x38   : > { %p500_p5 = por %p499_p7, %p498_p0 }
  0x39   : > { %211 = vmatpush.msra.mxu0 %v182_v8  ;;  %231 = vmatpush.msra.mxu1 %v183_v9  ;;  %p496_p13 = pneg %p495_p6 }
  0x3a   : > { %346 = vmatmul.msk.f32.vlgmr.msra.gmra.mxu0 %vm192_vm0, %v181_v10  ;;  %347 = vmatmul.msk.f32.vlgmr.msra.gmra.mxu1 %vm192_vm0, %v181_v10 }
  0x3b   : > { %p501_p8 = pnand %p500_p5, %p496_p13 }
  0xb7   : > { %v213_v11 = vpop.f32.mrf.mxu0  ;;  %v233_v12 = vpop.f32.mrf.mxu1 }
  0xb8   : > { %236 = vst [vmem:[%s178_s17] sm:$0xff] %v213_v11 }
  0xb9   : > { %237 = vst [vmem:[%s178_s17 + $0x8] sm:$0xff] %v233_v12 }
  0xba   : > { %504 = shalt.err (!%p501_p8)
}
  0xbb   : > { %363 = dma.vmem_to_hbm [thread:$0]  (%p620_p11), %s253_s19, 256, %s255_s25, %s239_s26  }
  0xbc PF: > { %s266_s6 = sand.u32 1, %s535_s9   ;;  %p720_p9 = scmp.ge.s32.totalorder %s547_s12, 2 }
  0xbd   : > { %s267_s7 = scalar_lea.sflag [#allocation4], %s266_s6 }
  0xbe   : > { %p374_p10 = pnand %p720_p9, %p624_p12 }
  0xc0   : > { %p375_p1 = pneg %p374_p10 }
  0xc2   : > { %530 = dma.done.wait (%p375_p1), %s267_s7, 256  }
  0xc3   : > { %532 = vsyncadd (%p375_p1), %s267_s7, 4294967040  ;;  %p16_p2 = scmp.ge.s32.totalorder %s593_s15, 4   ;;  %s721_s9 = smov %s539_s10 }
  0xc4   : > { %s722_s10 = smov %s543_s11  ;;  %s723_s11 = smov %s605_s18 }
  0xc5   : > { %s724_s12 = smov %s593_s15  ;;  %18 = sbr.rel (!%p16_p2) target bundleno = 6 (0x6), region = 78 }
  0xca   :  { %273 = vsyncpa [#allocation3], 1 }
  0xcb   :  { %275 = vsyncpa [#allocation3 + $0x1], 1 }
  0xcc   :  { %276 = vsyncpa [#allocation6], 1 }
  0xcd   :  { %278 = vsyncpa [#allocation6 + $0x1], 1 }
  0xce   :  { %279 = vsyncpa [#allocation4], 1 }
  0xcf   :  { %281 = vsyncpa [#allocation4 + $0x1], 1 }

</bundles_post_ra>
